<compile_context>
chip_gen: v7x
topology: tpu7x:2x2x1
jax: 0.10.0
libtpu: 0.0.40
codegen_flags: <defaults>
</compile_context>

<pallas_src>
import functools
import math

import jax
import jax.numpy as jnp
from jax.experimental import pallas as pl
from jax.experimental.pallas import tpu as pltpu


# --------------------------------------------------------------------------- #
# Kernel                                                                      #
# --------------------------------------------------------------------------- #
def _resb_kernel(x_ref, w1_ref, b1_ref, w2_ref, b2_ref, o_ref, *, H, negslope):
    # x_ref : (TB, H, WCp)    bf16, un-padded-in-H input block (TB (n,d) slices)
    # w*_ref: (WCp, 3*WCp)    bf16, BN-folded fused band (ky=0|1|2 stacked on N)
    # b*_ref: (1, WCp)        f32,  BN-folded bias tiled over W
    # o_ref : (TB, H, WCp)    bf16
    TB, _, WCp = x_ref.shape
    x_bf = x_ref[...]                                     # bf16, reused for residual
    zrow = jnp.zeros((TB, 1, WCp), jnp.float32)

    def conv(a_bf16, w_ref, b_ref):
        # Single fused MXU pass: (TB*H, WCp) x (WCp, 3*WCp) -> f32, then the
        # H halo is applied on the OUTPUT side (row-shifted adds of the three
        # chunks) so no shifted input copies are materialized.
        p = jnp.dot(a_bf16.reshape(TB * H, WCp), w_ref[...],
                    preferred_element_type=jnp.float32)
        p = p.reshape(TB, H, 3 * WCp)
        p0 = p[:, :, :WCp]            # contribution of input row h   to output row h+1
        p1 = p[:, :, WCp:2 * WCp]     # same-row contribution
        p2 = p[:, :, 2 * WCp:]        # contribution of input row h   to output row h-1
        y = p1 + b_ref[...]                                           # (1,WCp) broadcasts
        y = y + jnp.concatenate([zrow, p0[:, :H - 1, :]], axis=1)     # out[h] += p0[h-1]
        y = y + jnp.concatenate([p2[:, 1:, :], zrow], axis=1)         # out[h] += p2[h+1]
        return y                                                      # f32

    h1 = conv(x_bf, w1_ref, b1_ref)
    h1 = jnp.where(h1 > 0, h1, negslope * h1)             # LeakyReLU(0.1) in f32
    y2 = conv(h1.astype(jnp.bfloat16), w2_ref, b2_ref)
    o_ref[...] = (x_bf.astype(jnp.float32) + y2).astype(o_ref.dtype)  # residual in f32


# --------------------------------------------------------------------------- #
# Wrapper-side helpers                                                        #
# --------------------------------------------------------------------------- #
def _gen_params():
    """(block VMEM budget, vmem_limit_bytes, prefer >=2 grid steps) per TPU gen."""
    kind = ""
    try:
        kind = jax.devices()[0].device_kind.lower()
    except Exception:
        pass
    if "v7" in kind or "7x" in kind:
        # 2 TensorCores share the work; 64 MiB physical VMEM per core.
        return 16 * 1024 * 1024, 40 * 1024 * 1024, True
    # v5e / v6e: single TensorCore, 128 MiB VMEM.
    return 24 * 1024 * 1024, 64 * 1024 * 1024, False


def _pad_channels(C, W, lane=128):
    """Smallest Cp >= C with W*Cp a multiple of `lane`; keep C if too wasteful."""
    g = math.gcd(W, lane)
    step = lane // g
    Cp = ((C + step - 1) // step) * step
    if Cp > max(2 * C, C + 8):
        return C          # padding overhead too large -> full-dim (masked-store) fallback
    return Cp


def _pick_tb(nd, h, wcp, *, budget_bytes, prefer_multi_step):
    """Slices per grid step: largest divisor of nd fitting the VMEM budget.
    Accounts for double-buffered in/out blocks, in-kernel f32 temporaries and
    the (grid-invariant, double-buffered) fused band weights."""
    per_tb = (2 * 2 * h * wcp * 2) + (10 * h * wcp * 4)          # bf16 I/O bufs + f32 temps
    fixed = 2 * 2 * (wcp * 3 * wcp * 2) + 2 * 2 * (wcp * 4)      # 2 weight tensors + biases
    cap = max(1, (budget_bytes - fixed) // per_tb)
    cap = min(cap, nd)
    divisors = [t for t in range(1, cap + 1) if nd % t == 0]
    if prefer_multi_step:                                        # v7x: keep both TCs busy
        pref = [t for t in divisors if nd // t >= 2]
        if pref:
            return max(pref)
    return max(divisors) if divisors else 1


def build_fused_band(w_taps, b, W, Cp):
    """Fold 3x3 taps (3,3,C,C) + bias (C,) into a lane-padded fused band.

    Returns wfused (W*Cp, 3*W*Cp) bf16 with the three ky bands concatenated on
    the N axis, and bias (1, W*Cp) f32.  Band_ky[w'*Cp+ci, w*Cp+co] =
    taps[ky, w'-w+1, ci, co] (zero outside |w'-w|<=1), which also implements the
    zero W-padding; padded channels get all-zero rows/columns."""
    C = w_taps.shape[-1]
    wt = jnp.zeros((3, 3, Cp, Cp), jnp.float32).at[:, :, :C, :C].set(w_taps)
    bp = jnp.zeros((Cp,), jnp.float32).at[:C].set(b)
    WC = W * Cp
    wp = jnp.arange(W)[:, None]    # input column w'
    wq = jnp.arange(W)[None, :]    # output column w
    bands = []
    for ky in range(3):
        blk = jnp.zeros((W, Cp, W, Cp), jnp.float32)
        for kx in range(3):
            mask = (wp == wq + (kx - 1)).astype(jnp.float32)               # (W, W)
            blk = blk + mask[:, None, :, None] * wt[ky, kx][None, :, None, :]
        bands.append(blk.reshape(WC, WC))
    wfused = jnp.concatenate(bands, axis=1).astype(jnp.bfloat16)           # (WC, 3*WC)
    bband = jnp.tile(bp, W).reshape(1, WC)                                 # (1, WC) f32
    return wfused, bband


# --------------------------------------------------------------------------- #
# Public entry point (channel-last activations)                               #
# --------------------------------------------------------------------------- #
def resb_pallas(x_ndhwc, params):
    """x_ndhwc: (N, D, H, W, C) channel-last activations (layout kept channel-last
    across the model so no NCDHW<->NDHWC HBM transposes are needed).
    params: BN-folded (w1_taps, b1, w2_taps, b2) with w*_taps (3,3,Cin,Cout)."""
    N, D, H, W, C = x_ndhwc.shape
    w1t, b1, w2t, b2 = params
    ND = N * D

    Cp = _pad_channels(C, W)
    WCp = W * Cp

    wf1, bb1 = build_fused_band(w1t, b1, W, Cp)
    wf2, bb2 = build_fused_band(w2t, b2, W, Cp)

    # Single fused pad(channels)+cast(bf16) pass; reshapes are free (contiguous).
    # In a bf16 / channel-padded-resident model even this pass disappears.
    xp = x_ndhwc
    if Cp != C:
        xp = jnp.pad(xp, ((0, 0), (0, 0), (0, 0), (0, 0), (0, Cp - C)))
    x2 = xp.astype(jnp.bfloat16).reshape(ND, H, WCp)

    budget, vmem_limit, multi_step = _gen_params()
    TB = _pick_tb(ND, H, WCp, budget_bytes=budget, prefer_multi_step=multi_step)
    grid = (ND // TB,)

    out = pl.pallas_call(
        functools.partial(_resb_kernel, H=H, negslope=0.1),
        out_shape=jax.ShapeDtypeStruct((ND, H, WCp), jnp.bfloat16),
        grid=grid,
        in_specs=[
            pl.BlockSpec((TB, H, WCp), lambda i: (i, 0, 0)),
            pl.BlockSpec((WCp, 3 * WCp), lambda i: (0, 0)),   # grid-invariant weights
            pl.BlockSpec((1, WCp), lambda i: (0, 0)),
            pl.BlockSpec((WCp, 3 * WCp), lambda i: (0, 0)),
            pl.BlockSpec((1, WCp), lambda i: (0, 0)),
        ],
        out_specs=pl.BlockSpec((TB, H, WCp), lambda i: (i, 0, 0)),
        compiler_params=pltpu.CompilerParams(
            dimension_semantics=("parallel",),
            vmem_limit_bytes=vmem_limit),
    )(x2, wf1, bb1, wf2, bb2)

    out = out.reshape(N, D, H, W, Cp)
    if Cp != C:
        out = out[..., :C]
    return out.astype(x_ndhwc.dtype)


# --------------------------------------------------------------------------- #
# Synthetic params (eval-mode BN folded) and plain-JAX reference              #
# --------------------------------------------------------------------------- #
def make_folded_params(key, C, eps=1e-5):
    """Deterministic synthetic params; BN (eval mode) folded into the convs.
    Returns tap-major folded weights (3, 3, Cin, Cout) and biases (Cout,)."""
    ks = jax.random.split(key, 12)

    def fold(wk, bk, gk, betak, mk, vk):
        w = 0.1 * jax.random.normal(wk, (C, C, 1, 3, 3), jnp.float32)   # PyTorch OIDHW
        b = 0.1 * jax.random.normal(bk, (C,), jnp.float32)
        gamma = 1.0 + 0.1 * jax.random.normal(gk, (C,), jnp.float32)
        beta = 0.1 * jax.random.normal(betak, (C,), jnp.float32)
        mean = 0.1 * jax.random.normal(mk, (C,), jnp.float32)
        var = 0.5 + jnp.abs(jax.random.normal(vk, (C,), jnp.float32))
        s = gamma / jnp.sqrt(var + eps)                                  # per-out-channel
        w_eff = w[:, :, 0, :, :] * s[:, None, None, None]                # (Cout,Cin,3,3)
        b_eff = (b - mean) * s + beta
        w_taps = jnp.transpose(w_eff, (2, 3, 1, 0))                      # (ky,kx,Cin,Cout)
        return w_taps, b_eff

    w1, b1 = fold(*ks[0:6])
    w2, b2 = fold(*ks[6:12])
    return w1, b1, w2, b2


def resb_reference(x_ndhwc, params):
    """Plain-JAX reference with identical math (channel-last, f32)."""
    N, D, H, W, C = x_ndhwc.shape
    w1, b1, w2, b2 = params
    x = x_ndhwc.reshape(N * D, H, W, C)

    def conv3x3(inp, wt, b):
        xp = jnp.pad(inp, ((0, 0), (1, 1), (1, 1), (0, 0)))
        acc = jnp.zeros_like(inp)
        for ky in range(3):
            for kx in range(3):
                acc = acc + jnp.einsum('nhwc,cd->nhwd',
                                       xp[:, ky:ky + H, kx:kx + W, :], wt[ky, kx],
                                       precision=jax.lax.Precision.HIGHEST)
        return acc + b

    h = conv3x3(x, w1, b1)
    h = jnp.where(h > 0, h, 0.1 * h)
    out = x + conv3x3(h, w2, b2)
    return out.reshape(N, D, H, W, C)


if __name__ == "__main__":
    key = jax.random.PRNGKey(0)
    kx, kp = jax.random.split(key)

    N, C, D, H, W = 2, 4, 3, 16, 16
    # Channel-last activations: layout is kept channel-last across the model
    # (removes the wrapper-side NCDHW<->NDHWC HBM round-trips flagged in review).
    x = jax.random.normal(kx, (N, D, H, W, C), jnp.float32)
    params = make_folded_params(kp, C)

    out = jax.block_until_ready(resb_pallas(x, params))
    assert out.shape == x.shape and out.dtype == x.dtype

    # Compare against the f32 reference evaluated on the same bf16-rounded input
    # the kernel consumes; remaining error is bf16 weight/activation rounding.
    x_q = x.astype(jnp.bfloat16).astype(jnp.float32)
    ref = resb_reference(x_q, params)
    max_err = float(jnp.max(jnp.abs(out - ref)))
    assert jnp.allclose(out, ref, rtol=2e-2, atol=2e-2), (
        f"mismatch vs reference (max |err| = {max_err:.4f})")

    print("KERNEL_OK")
</pallas_src>

<mosaic_0001>
module attributes {stable_mosaic.version = 11 : i64} {
  func.func @_resb_kernel(%arg0: i32, %arg1: memref<6x16x128xbf16, #tpu.memory_space<vmem>>, %arg2: memref<128x384xbf16, #tpu.memory_space<vmem>>, %arg3: memref<1x128xf32, #tpu.memory_space<vmem>>, %arg4: memref<128x384xbf16, #tpu.memory_space<vmem>>, %arg5: memref<1x128xf32, #tpu.memory_space<vmem>>, %arg6: memref<6x16x128xbf16, #tpu.memory_space<vmem>>) attributes {dimension_semantics = [#tpu.dimension_semantics<parallel>], iteration_bounds = array<i64: 1>, scalar_prefetch = 0 : i64, scratch_operands = 0 : i64, tpu.core_type = #tpu.core_type<tc>, window_params = [{transform_indices = @transform_0, window_bounds = array<i64: 6, 16, 128>}, {pipeline_mode = #tpu.pipeline_mode<synchronous>, transform_indices = @transform_1, window_bounds = array<i64: 128, 384>}, {pipeline_mode = #tpu.pipeline_mode<synchronous>, transform_indices = @transform_2, window_bounds = array<i64: 1, 128>}, {pipeline_mode = #tpu.pipeline_mode<synchronous>, transform_indices = @transform_3, window_bounds = array<i64: 128, 384>}, {pipeline_mode = #tpu.pipeline_mode<synchronous>, transform_indices = @transform_4, window_bounds = array<i64: 1, 128>}, {transform_indices = @transform_5, window_bounds = array<i64: 6, 16, 128>}]} {
    %c0 = arith.constant 0 : index
    %c0_0 = arith.constant 0 : index
    %c0_1 = arith.constant 0 : index
    %0 = vector.load %arg1[%c0, %c0_0, %c0_1] : memref<6x16x128xbf16, #tpu.memory_space<vmem>>, vector<6x16x128xbf16>
    %cst = arith.constant 0.000000e+00 : f32
    %1 = vector.broadcast %cst : f32 to vector<6x1x128xf32>
    %2 = vector.shape_cast %0 : vector<6x16x128xbf16> to vector<96x128xbf16>
    %c0_2 = arith.constant 0 : index
    %c0_3 = arith.constant 0 : index
    %3 = vector.load %arg2[%c0_2, %c0_3] : memref<128x384xbf16, #tpu.memory_space<vmem>>, vector<128x384xbf16>
    %cst_4 = arith.constant dense<0.000000e+00> : vector<96x384xf32>
    %4 = tpu.matmul %2, %3, %cst_4 {dimension_numbers = #tpu.dot_dimension_numbers<[1], [0], [0], [1], [0, 0, 1, 1], [], []>} : vector<96x128xbf16>, vector<128x384xbf16>, vector<96x384xf32> -> vector<96x384xf32>
    %5 = vector.shape_cast %4 : vector<96x384xf32> to vector<6x16x384xf32>
    %6 = vector.extract_strided_slice %5 {offsets = [0, 0, 0], sizes = [6, 16, 128], strides = [1, 1, 1]} : vector<6x16x384xf32> to vector<6x16x128xf32>
    %7 = vector.extract_strided_slice %5 {offsets = [0, 0, 128], sizes = [6, 16, 128], strides = [1, 1, 1]} : vector<6x16x384xf32> to vector<6x16x128xf32>
    %8 = vector.extract_strided_slice %5 {offsets = [0, 0, 256], sizes = [6, 16, 128], strides = [1, 1, 1]} : vector<6x16x384xf32> to vector<6x16x128xf32>
    %c0_5 = arith.constant 0 : index
    %c0_6 = arith.constant 0 : index
    %9 = vector.load %arg3[%c0_5, %c0_6] : memref<1x128xf32, #tpu.memory_space<vmem>>, vector<1x128xf32>
    %10 = vector.shape_cast %9 : vector<1x128xf32> to vector<1x1x128xf32>
    %11 = vector.broadcast %10 : vector<1x1x128xf32> to vector<6x16x128xf32>
    %12 = arith.addf %7, %11 : vector<6x16x128xf32>
    %13 = vector.extract_strided_slice %6 {offsets = [0, 0, 0], sizes = [6, 15, 128], strides = [1, 1, 1]} : vector<6x16x128xf32> to vector<6x15x128xf32>
    %14 = tpu.concatenate %1, %13 in 1 : vector<6x1x128xf32>, vector<6x15x128xf32> -> vector<6x16x128xf32>
    %15 = arith.addf %12, %14 : vector<6x16x128xf32>
    %16 = vector.extract_strided_slice %8 {offsets = [0, 1, 0], sizes = [6, 15, 128], strides = [1, 1, 1]} : vector<6x16x128xf32> to vector<6x15x128xf32>
    %17 = tpu.concatenate %16, %1 in 1 : vector<6x15x128xf32>, vector<6x1x128xf32> -> vector<6x16x128xf32>
    %18 = arith.addf %15, %17 : vector<6x16x128xf32>
    %cst_7 = arith.constant 0.000000e+00 : f32
    %19 = vector.broadcast %cst_7 : f32 to vector<6x16x128xf32>
    %20 = arith.cmpf ogt, %18, %19 : vector<6x16x128xf32>
    %cst_8 = arith.constant 1.000000e-01 : f32
    %21 = vector.broadcast %cst_8 : f32 to vector<6x16x128xf32>
    %22 = arith.mulf %21, %18 : vector<6x16x128xf32>
    %23 = arith.select %20, %18, %22 : vector<6x16x128xi1>, vector<6x16x128xf32>
    %24 = arith.truncf %23 : vector<6x16x128xf32> to vector<6x16x128xbf16>
    %25 = vector.shape_cast %24 : vector<6x16x128xbf16> to vector<96x128xbf16>
    %c0_9 = arith.constant 0 : index
    %c0_10 = arith.constant 0 : index
    %26 = vector.load %arg4[%c0_9, %c0_10] : memref<128x384xbf16, #tpu.memory_space<vmem>>, vector<128x384xbf16>
    %cst_11 = arith.constant dense<0.000000e+00> : vector<96x384xf32>
    %27 = tpu.matmul %25, %26, %cst_11 {dimension_numbers = #tpu.dot_dimension_numbers<[1], [0], [0], [1], [0, 0, 1, 1], [], []>} : vector<96x128xbf16>, vector<128x384xbf16>, vector<96x384xf32> -> vector<96x384xf32>
    %28 = vector.shape_cast %27 : vector<96x384xf32> to vector<6x16x384xf32>
    %29 = vector.extract_strided_slice %28 {offsets = [0, 0, 0], sizes = [6, 16, 128], strides = [1, 1, 1]} : vector<6x16x384xf32> to vector<6x16x128xf32>
    %30 = vector.extract_strided_slice %28 {offsets = [0, 0, 128], sizes = [6, 16, 128], strides = [1, 1, 1]} : vector<6x16x384xf32> to vector<6x16x128xf32>
    %31 = vector.extract_strided_slice %28 {offsets = [0, 0, 256], sizes = [6, 16, 128], strides = [1, 1, 1]} : vector<6x16x384xf32> to vector<6x16x128xf32>
    %c0_12 = arith.constant 0 : index
    %c0_13 = arith.constant 0 : index
    %32 = vector.load %arg5[%c0_12, %c0_13] : memref<1x128xf32, #tpu.memory_space<vmem>>, vector<1x128xf32>
    %33 = vector.shape_cast %32 : vector<1x128xf32> to vector<1x1x128xf32>
    %34 = vector.broadcast %33 : vector<1x1x128xf32> to vector<6x16x128xf32>
    %35 = arith.addf %30, %34 : vector<6x16x128xf32>
    %36 = vector.extract_strided_slice %29 {offsets = [0, 0, 0], sizes = [6, 15, 128], strides = [1, 1, 1]} : vector<6x16x128xf32> to vector<6x15x128xf32>
    %37 = tpu.concatenate %1, %36 in 1 : vector<6x1x128xf32>, vector<6x15x128xf32> -> vector<6x16x128xf32>
    %38 = arith.addf %35, %37 : vector<6x16x128xf32>
    %39 = vector.extract_strided_slice %31 {offsets = [0, 1, 0], sizes = [6, 15, 128], strides = [1, 1, 1]} : vector<6x16x128xf32> to vector<6x15x128xf32>
    %40 = tpu.concatenate %39, %1 in 1 : vector<6x15x128xf32>, vector<6x1x128xf32> -> vector<6x16x128xf32>
    %41 = arith.addf %38, %40 : vector<6x16x128xf32>
    %42 = arith.extf %0 : vector<6x16x128xbf16> to vector<6x16x128xf32>
    %43 = arith.addf %42, %41 : vector<6x16x128xf32>
    %44 = arith.truncf %43 : vector<6x16x128xf32> to vector<6x16x128xbf16>
    %c0_14 = arith.constant 0 : index
    %c0_15 = arith.constant 0 : index
    %c0_16 = arith.constant 0 : index
    %45 = vector.load %arg6[%c0_14, %c0_15, %c0_16] : memref<6x16x128xbf16, #tpu.memory_space<vmem>>, vector<6x16x128xbf16>
    tpu.vector_store %arg6[%c0_14, %c0_15, %c0_16], %44 {strides = array<i32>} : memref<6x16x128xbf16, #tpu.memory_space<vmem>>, vector<6x16x128xbf16>,
    return
  }
  func.func @transform_0(%arg0: i32) -> (i32, i32, i32) {
    %c0_i32 = arith.constant 0 : i32
    %c0_i32_0 = arith.constant 0 : i32
    %c0_i32_1 = arith.constant 0 : i32
    return %arg0, %c0_i32, %c0_i32_0 : i32, i32, i32
  }
  func.func @transform_1(%arg0: i32) -> (i32, i32) {
    %c0_i32 = arith.constant 0 : i32
    %c0_i32_0 = arith.constant 0 : i32
    %c0_i32_1 = arith.constant 0 : i32
    return %c0_i32, %c0_i32_0 : i32, i32
  }
  func.func @transform_2(%arg0: i32) -> (i32, i32) {
    %c0_i32 = arith.constant 0 : i32
    %c0_i32_0 = arith.constant 0 : i32
    %c0_i32_1 = arith.constant 0 : i32
    return %c0_i32, %c0_i32_0 : i32, i32
  }
  func.func @transform_3(%arg0: i32) -> (i32, i32) {
    %c0_i32 = arith.constant 0 : i32
    %c0_i32_0 = arith.constant 0 : i32
    %c0_i32_1 = arith.constant 0 : i32
    return %c0_i32, %c0_i32_0 : i32, i32
  }
  func.func @transform_4(%arg0: i32) -> (i32, i32) {
    %c0_i32 = arith.constant 0 : i32
    %c0_i32_0 = arith.constant 0 : i32
    %c0_i32_1 = arith.constant 0 : i32
    return %c0_i32, %c0_i32_0 : i32, i32
  }
  func.func @transform_5(%arg0: i32) -> (i32, i32, i32) {
    %c0_i32 = arith.constant 0 : i32
    %c0_i32_0 = arith.constant 0 : i32
    %c0_i32_1 = arith.constant 0 : i32
    return %arg0, %c0_i32, %c0_i32_0 : i32, i32, i32
  }
}

</mosaic_0001>

<bundles_post_ra>
// kernel: tpu_custom_call.1
= control target key start
LH: loop header
LB: loop body
LE: loop exit
PB: predicated region body
PF: predicated region fallthrough
CT: control target
= control target key end

     0   :  { %10 = vsyncpa [#allocation3], 0  ;;  %s1913_s0 = inlined_call_operand.hbm [shape: bf16[6,16,128], index: 0, kind: input, shape index: {}]   ;;  %s1914_s1 = inlined_call_operand.hbm [shape: bf16[128,384], index: 1, kind: input, shape index: {}]   ;;  %s1915_s2 = inlined_call_operand.hbm [shape: f32[1,128], index: 2, kind: input, shape index: {}]   ;;  %s1916_s3 = inlined_call_operand.hbm [shape: bf16[128,384], index: 3, kind: input, shape index: {}]   ;;  %s1917_s4 = inlined_call_operand.hbm [shape: f32[1,128], index: 4, kind: input, shape index: {}]   ;;  %s1918_s5 = inlined_call_operand.hbm [shape: bf16[6,16,128], index: 5, kind: output, shape index: {}]  }
   0x1   :  { %11 = vsyncpa [#allocation6], 0 }
   0x2   :  { %12 = vsyncpa [#allocation9], 0 }
   0x3   :  { %13 = vsyncpa [#allocation4], 0  ;;  %s1653_s18 = smov [#allocation5]   ;;  %s1513_s22 = scalar_lea.hbm %s1914_s1, 3072 }
   0x4   :  { %s31_s19 = sshll.u32 %s1653_s18, 4  ;;  %p1514_p0 = scmp.ne.s32.totalorder %s1914_s1, %s1513_s22  ;;  %s32_s19 = int_to_ptr.vmem [resolvable:$true] %s31_s19 }
   0x5   :  { %p1517_p1 = scmp.lt.u32.totalorder %s1513_s22, %s1914_s1 }
   0x7   :  { %p1519_p2 = pnand %p1517_p1, %p1514_p0 }
   0x9   :  { %1522 = shalt.err (!%p1519_p2)
}
   0xa   :  { %s1523_s27 = scalar_lea.vmem %s32_s19, 3072  ;;  %p1528_p4 = scmp.lt.s32.totalorder %s32_s19, %s32_s19 }
   0xb   :  { %p1524_p3 = scmp.ne.s32.totalorder %s32_s19, %s1523_s27  ;;  %p1529_p5 = scmp.lt.s32.totalorder %s1523_s27, %s1523_s27 }
   0xd   :  { %p1530_p6 = por %p1529_p5, %p1528_p4 }
   0xf   :  { %p1531_p7 = pnand %p1530_p6, %p1524_p3 }
  0x11   :  { %1534 = shalt.err (!%p1531_p7)
}
  0x12   :  { %s1654_s28 = smov 192   ;;  %s1655_s29 = smov 12  }
  0x13   :  { %37 = dma.hbm_to_vmem [thread:$0]  %s1914_s1, 3072, %s32_s19, [#allocation6], %s1654_s28, %s1654_s28, %s1655_s29  }
  0x14   :  { %s1656_s7 = smov [#allocation8]   ;;  %s1657_s9 = smov [#allocation2]  }
  0x15   :  { %s53_s8 = sshll.u32 %s1656_s7, 4  ;;  %s19_s10 = sshll.u32 %s1657_s9, 4  ;;  %s54_s8 = int_to_ptr.vmem [resolvable:$true] %s53_s8  ;;  %s20_s10 = int_to_ptr.vmem [resolvable:$true] %s19_s10 }
  0x16   :  { %s1535_s13 = scalar_lea.hbm %s1916_s3, 3072 }
  0x17   :  { %p1536_p8 = scmp.ne.s32.totalorder %s1916_s3, %s1535_s13  ;;  %p1539_p9 = scmp.lt.u32.totalorder %s1535_s13, %s1916_s3 }
  0x19   :  { %p1541_p10 = pnand %p1539_p9, %p1536_p8 }
  0x1b   :  { %1544 = shalt.err (!%p1541_p10)
}
  0x1c   :  { %s1545_s1 = scalar_lea.vmem %s54_s8, 3072  ;;  %p1550_p12 = scmp.lt.s32.totalorder %s54_s8, %s54_s8 }
  0x1d   :  { %p1546_p11 = scmp.ne.s32.totalorder %s54_s8, %s1545_s1  ;;  %p1551_p13 = scmp.lt.s32.totalorder %s1545_s1, %s1545_s1 }
  0x1f   :  { %p1552_p0 = por %p1551_p13, %p1550_p12 }
  0x21   :  { %p1553_p1 = pnand %p1552_p0, %p1546_p11 }
  0x23   :  { %1556 = shalt.err (!%p1553_p1)
}
  0x24   :  { %59 = dma.hbm_to_vmem [thread:$0]  %s1916_s3, 3072, %s54_s8, [#allocation9], %s1654_s28, %s1654_s28, %s1655_s29  }
  0x25   :  { %s1557_s22 = scalar_lea.hbm %s1913_s0, 768 }
  0x26   :  { %p1558_p2 = scmp.ne.s32.totalorder %s1913_s0, %s1557_s22  ;;  %p1561_p3 = scmp.lt.u32.totalorder %s1557_s22, %s1913_s0 }
  0x28   :  { %p1563_p4 = pnand %p1561_p3, %p1558_p2 }
  0x2a   :  { %1566 = shalt.err (!%p1563_p4)
}
  0x2b   :  { %s1567_s27 = scalar_lea.vmem %s20_s10, 768  ;;  %p1572_p6 = scmp.lt.s32.totalorder %s20_s10, %s20_s10 }
  0x2c   :  { %p1568_p5 = scmp.ne.s32.totalorder %s20_s10, %s1567_s27  ;;  %p1573_p7 = scmp.lt.s32.totalorder %s1567_s27, %s1567_s27 }
  0x2e   :  { %p1574_p8 = por %p1573_p7, %p1572_p6 }
  0x30   :  { %p1575_p9 = pnand %p1574_p8, %p1568_p5 }
  0x32   :  { %1578 = shalt.err (!%p1575_p9)
}
  0x33   :  { %s1658_s3 = smov 64   ;;  %s1659_s28 = smov 4  }
  0x34   :  { %25 = dma.hbm_to_vmem [thread:$0]  %s1913_s0, 768, %s20_s10, [#allocation3], %s1658_s3, %s1658_s3, %s1659_s28  }
  0x35   :  { %s1660_s6 = smov [#allocation7]   ;;  %s1661_s8 = smov [#allocation10]  }
  0x36   :  { %s44_s7 = sshll.u32 %s1660_s6, 4  ;;  %s66_s9 = sshll.u32 %s1661_s8, 4  ;;  %s45_s7 = int_to_ptr.vmem [resolvable:$true] %s44_s7  ;;  %s67_s9 = int_to_ptr.vmem [resolvable:$true] %s66_s9 }
  0x37   :  { %s1579_s13 = scalar_lea.hbm %s1915_s2, 16 }
  0x38   :  { %p1580_p10 = scmp.ne.s32.totalorder %s1915_s2, %s1579_s13  ;;  %p1583_p11 = scmp.lt.u32.totalorder %s1579_s13, %s1915_s2 }
  0x3a   :  { %p1585_p12 = pnand %p1583_p11, %p1580_p10 }
  0x3c   :  { %1588 = shalt.err (!%p1585_p12)
}
  0x3d   :  { %s1589_s0 = scalar_lea.vmem %s45_s7, 16  ;;  %s1593_s10 = scalar_lea.vmem %s45_s7, 32 }
  0x3e   :  { %p1590_p13 = scmp.ne.s32.totalorder %s45_s7, %s1589_s0  ;;  %p1594_p0 = scmp.lt.s32.totalorder %s45_s7, %s45_s7 }
  0x3f   :  { %p1595_p1 = scmp.lt.s32.totalorder %s1593_s10, %s1589_s0 }
  0x41   :  { %p1596_p2 = por %p1595_p1, %p1594_p0 }
  0x43   :  { %p1597_p3 = pnand %p1596_p2, %p1590_p13 }
  0x45   :  { %1600 = shalt.err (!%p1597_p3)
}
  0x46   :  { %47 = dma.hbm_to_vmem [thread:$0]  %s1915_s2, 16, %s45_s7, [#allocation6]  }
  0x47   :  { %s1601_s21 = scalar_lea.hbm %s1917_s4, 16 }
  0x48   :  { %p1602_p4 = scmp.ne.s32.totalorder %s1917_s4, %s1601_s21  ;;  %p1605_p5 = scmp.lt.u32.totalorder %s1601_s21, %s1917_s4 }
  0x4a   :  { %p1607_p6 = pnand %p1605_p5, %p1602_p4 }
  0x4c   :  { %1610 = shalt.err (!%p1607_p6)
}
  0x4d   :  { %s1611_s26 = scalar_lea.vmem %s67_s9, 16  ;;  %s1615_s27 = scalar_lea.vmem %s67_s9, 32 }
  0x4e   :  { %p1612_p7 = scmp.ne.s32.totalorder %s67_s9, %s1611_s26  ;;  %p1616_p8 = scmp.lt.s32.totalorder %s67_s9, %s67_s9 }
  0x4f   :  { %p1617_p9 = scmp.lt.s32.totalorder %s1615_s27, %s1611_s26 }
  0x51   :  { %p1618_p10 = por %p1617_p9, %p1616_p8 }
  0x53   :  { %p1619_p11 = pnand %p1618_p10, %p1612_p7 }
  0x55   :  { %1622 = shalt.err (!%p1619_p11)
}
  0x56   :  { %69 = dma.hbm_to_vmem [thread:$0]  %s1917_s4, 16, %s67_s9, [#allocation9]  }
  0x57   :  { %1645 = dma.done.wait [#allocation3], 768  }
  0x58   :  { %1646 = vsyncadd [#allocation3], 4294966528 }
  0x59   :  { %1647 = dma.done.wait [#allocation6], 3088  }
  0x5a   :  { %1648 = vsyncadd [#allocation6], 4294964208 }
  0x5b   :  { %1649 = dma.done.wait [#allocation9], 3088  }
  0x5c   :  { %1650 = vsyncadd [#allocation9], 4294964208  ;;  %v1662_v0 = vmov 0   ;;  %v1437_v1 = vld [vmem:[#allocation5 + $0x4] ss:$12 sps:$4 sm:$0xff]   ;;  %v1761_v26 = vld [vmem:[#allocation2 + $0x8] sm:$0xff]  }
  0x5d   :  { %326 = vmatprep.mubr.bf16.mxu0 %v1662_v0  ;;  %v1439_v2 = vld [vmem:[#allocation5 + $0x8] ss:$12 sps:$4 sm:$0xff]   ;;  %294 = vmatprep.subr.bf16.mxu0 %v1437_v1  ;;  %v1440_v3 = vld [vmem:[#allocation5] ss:$12 sps:$4 sm:$0xff]   ;;  %v1444_v6 = vld [vmem:[#allocation5 + $0x18] ss:$12 sps:$4 sm:$0xff]  }
  0x5e   :  { %1370 = vmatprep.subr.bf16.mxu1 %v1439_v2  ;;  %v1441_v4 = vld [vmem:[#allocation5 + $0x1c] ss:$12 sps:$4 sm:$0xff]   ;;  %295 = vmatpush1.bf16.msra.mxu0 %v1440_v3  ;;  %v1443_v5 = vld [vmem:[#allocation5 + $0x20] ss:$12 sps:$4 sm:$0xff]   ;;  %v1447_v8 = vld [vmem:[#allocation5 + $0x38] ss:$12 sps:$4 sm:$0xff]  }
  0x5f   :  { %1371 = vmatpush3.bf16.msra.mxu1 %v1439_v2  ;;  %296 = vmatprep.subr.bf16.mxu0 %v1441_v4  ;;  %v1445_v7 = vld [vmem:[#allocation5 + $0x34] ss:$12 sps:$4 sm:$0xff]   ;;  %v1448_v9 = vld [vmem:[#allocation5 + $0x30] ss:$12 sps:$4 sm:$0xff]   ;;  %v1449_v10 = vld [vmem:[#allocation5 + $0x4c] ss:$12 sps:$4 sm:$0xff]  }
  0x60   :  { %1372 = vmatprep.subr.bf16.mxu1 %v1443_v5  ;;  %v1451_v11 = vld [vmem:[#allocation5 + $0x50] ss:$12 sps:$4 sm:$0xff]   ;;  %v1452_v12 = vld [vmem:[#allocation5 + $0x48] ss:$12 sps:$4 sm:$0xff]   ;;  %v1456_v15 = vld [vmem:[#allocation5 + $0x60] ss:$12 sps:$4 sm:$0xff]  }
  0x61   :  { %v1453_v13 = vld [vmem:[#allocation5 + $0x64] ss:$12 sps:$4 sm:$0xff]   ;;  %v1455_v14 = vld [vmem:[#allocation5 + $0x68] ss:$12 sps:$4 sm:$0xff]   ;;  %v1459_v17 = vld [vmem:[#allocation5 + $0x80] ss:$12 sps:$4 sm:$0xff]  }
  0x62   :  { %297 = vmatpush1.bf16.msra.mxu0 %v1444_v6  ;;  %v1457_v16 = vld [vmem:[#allocation5 + $0x7c] ss:$12 sps:$4 sm:$0xff]   ;;  %v1758_v18 = vld [vmem:[#allocation2] sm:$0xff]   ;;  %v1460_v19 = vld [vmem:[#allocation5 + $0x78] ss:$12 sps:$4 sm:$0xff]   ;;  %vm499_vm0 = vcmask 1040384  }
  0x63   :  { %1373 = vmatpush3.bf16.msra.mxu1 %v1443_v5  ;;  %298 = vmatprep.subr.bf16.mxu0 %v1445_v7  ;;  %v1461_v20 = vld [vmem:[#allocation5 + $0x94] ss:$12 sps:$4 sm:$0xff]   ;;  %v1463_v21 = vld [vmem:[#allocation5 + $0x98] ss:$12 sps:$4 sm:$0xff]   ;;  %v1464_v22 = vld [vmem:[#allocation5 + $0x90] ss:$12 sps:$4 sm:$0xff]  }
  0x64   :  { %1374 = vmatprep.subr.bf16.mxu1 %v1447_v8  ;;  %1386 = vmatprep.mubr.bf16.mxu1 %v1758_v18  ;;  %v1465_v23 = vld [vmem:[#allocation5 + $0xac] ss:$12 sps:$4 sm:$0xff]   ;;  %v1467_v24 = vld [vmem:[#allocation5 + $0xb0] ss:$12 sps:$4 sm:$0xff]   ;;  %v1468_v25 = vld [vmem:[#allocation5 + $0xa8] ss:$12 sps:$4 sm:$0xff]  }
  0x65   :  { %v1763_v27 = vld [vmem:[#allocation2 + $0x10] sm:$0xff]   ;;  %v1484_v29 = vld [vmem:[#allocation8 + $0x8] ss:$12 sps:$4 sm:$0xff]   ;;  %v1487_v39 = vld [vmem:[#allocation8 + $0x4c] ss:$12 sps:$4 sm:$0xff]   ;;  %vm560_vm1 = vcmask 1046528  }
  0x66   :  { %299 = vmatpush1.bf16.msra.mxu0 %v1448_v9  ;;  %v1477_v28 = vld [vmem:[#allocation8 + $0x4] ss:$12 sps:$4 sm:$0xff]   ;;  %v1475_v30 = vld [vmem:[#allocation8] ss:$12 sps:$4 sm:$0xff]   ;;  %v1480_v31 = vld [vmem:[#allocation8 + $0x1c] ss:$12 sps:$4 sm:$0xff]  }
  0x67   :  { %1375 = vmatpush3.bf16.msra.mxu1 %v1447_v8  ;;  %300 = vmatprep.subr.bf16.mxu0 %v1449_v10  ;;  %v1488_v32 = vld [vmem:[#allocation8 + $0x20] ss:$12 sps:$4 sm:$0xff]   ;;  %v1478_v35 = vld [vmem:[#allocation8 + $0x18] ss:$12 sps:$4 sm:$0xff]   ;;  %v1481_v38 = vld [vmem:[#allocation8 + $0x30] ss:$12 sps:$4 sm:$0xff]  }
  0x68   :  { %1376 = vmatprep.subr.bf16.mxu1 %v1451_v11  ;;  %v1769_v33 = vld [vmem:[#allocation2 + $0x18] sm:$0xff]   ;;  %v1771_v34 = vld [vmem:[#allocation2 + $0x20] sm:$0xff]   ;;  %v1777_v40 = vld [vmem:[#allocation2 + $0x28] sm:$0xff]   ;;  %s1663_s4 = smov [#allocation11]  }
  0x69   :  { %v1483_v36 = vld [vmem:[#allocation8 + $0x34] ss:$12 sps:$4 sm:$0xff]   ;;  %v1492_v37 = vld [vmem:[#allocation8 + $0x38] ss:$12 sps:$4 sm:$0xff]   ;;  %v1495_v44 = vld [vmem:[#allocation8 + $0x7c] ss:$12 sps:$4 sm:$0xff]  }
  0x6a   :  { %301 = vmatpush1.bf16.msra.mxu0 %v1452_v12  ;;  %v1485_v41 = vld [vmem:[#allocation8 + $0x48] ss:$12 sps:$4 sm:$0xff]   ;;  %v1491_v42 = vld [vmem:[#allocation8 + $0x64] ss:$12 sps:$4 sm:$0xff]   ;;  %v1489_v43 = vld [vmem:[#allocation8 + $0x60] ss:$12 sps:$4 sm:$0xff]  }
  0x6b   :  { %1377 = vmatpush3.bf16.msra.mxu1 %v1451_v11  ;;  %302 = vmatprep.subr.bf16.mxu0 %v1453_v13  ;;  %v1496_v45 = vld [vmem:[#allocation8 + $0x50] ss:$12 sps:$4 sm:$0xff]   ;;  %v1493_v46 = vld [vmem:[#allocation8 + $0x78] ss:$12 sps:$4 sm:$0xff]   ;;  %v1499_v47 = vld [vmem:[#allocation8 + $0x94] ss:$12 sps:$4 sm:$0xff]  }
  0x6c   :  { %1378 = vmatprep.subr.bf16.mxu1 %v1455_v14  ;;  %v1500_v48 = vld [vmem:[#allocation8 + $0x68] ss:$12 sps:$4 sm:$0xff]   ;;  %v1497_v49 = vld [vmem:[#allocation8 + $0x90] ss:$12 sps:$4 sm:$0xff]   ;;  %v1503_v50 = vld [vmem:[#allocation8 + $0xac] ss:$12 sps:$4 sm:$0xff]  }
  0x6d   :  { %v1504_v51 = vld [vmem:[#allocation8 + $0x80] ss:$12 sps:$4 sm:$0xff]   ;;  %v1501_v52 = vld [vmem:[#allocation8 + $0xa8] ss:$12 sps:$4 sm:$0xff]   ;;  %v1505_v53 = vld [vmem:[#allocation8 + $0x98] ss:$12 sps:$4 sm:$0xff]  }
  0x6e   :  { %303 = vmatpush1.bf16.msra.mxu0 %v1456_v15  ;;  %v1506_v54 = vld [vmem:[#allocation8 + $0xb0] ss:$12 sps:$4 sm:$0xff]   ;;  %s1213_s30 = sshll.u32 %s1663_s4, 4  ;;  %s1214_s30 = int_to_ptr.vmem [resolvable:$true] %s1213_s30 }
  0x6f   :  { %1379 = vmatpush3.bf16.msra.mxu1 %v1455_v14  ;;  %304 = vmatprep.subr.bf16.mxu0 %v1457_v16  ;;  %v1788_v55 = vld [vmem:[#allocation7] ss:$0 sm:$0xff]  ;;  %s1623_s6 = scalar_lea.vmem %s1214_s30, 768  ;;  %p1628_p13 = scmp.lt.s32.totalorder %s1214_s30, %s1214_s30 }
  0x70   :  { %1380 = vmatprep.subr.bf16.mxu1 %v1459_v17  ;;  %p1624_p12 = scmp.ne.s32.totalorder %s1214_s30, %s1623_s6  ;;  %p1629_p0 = scmp.lt.s32.totalorder %s1623_s6, %s1623_s6 }
  0x72   :  { %305 = vmatpush1.bf16.msra.mxu0 %v1460_v19  ;;  %p1630_p1 = por %p1629_p0, %p1628_p13 }
  0x73   :  { %1381 = vmatpush3.bf16.msra.mxu1 %v1459_v17  ;;  %306 = vmatprep.subr.bf16.mxu0 %v1461_v20 }
  0x74   :  { %1382 = vmatprep.subr.bf16.mxu1 %v1463_v21  ;;  %p1631_p2 = pnand %p1630_p1, %p1624_p12 }
  0x76   :  { %307 = vmatpush1.bf16.msra.mxu0 %v1464_v22 }
  0x77   :  { %1383 = vmatpush3.bf16.msra.mxu1 %v1463_v21  ;;  %308 = vmatprep.subr.bf16.mxu0 %v1465_v23 }
  0x78   :  { %1384 = vmatprep.subr.bf16.mxu1 %v1467_v24 }
  0x7a   :  { %309 = vmatpush1.bf16.msra.mxu0 %v1468_v25 }
  0x7b   :  { %1385 = vmatpush3.bf16.msra.mxu1 %v1467_v24  ;;  %1398 = vmatprep.subr.bf16.mxu0 %v1484_v29 }
  0x7c   :  { %811 = vmatprep.subr.bf16.mxu1 %v1477_v28 }
  0x7d   :  { %327 = vmatmul.mubr.bf16.vlgmr.msra.gmra.mrb[0].mxu0 %v1758_v18 }
  0x7e   :  { %1387 = vmatmul.mubr.bf16.vlgmr.msra.gmra.mrb[0].mxu1 %v1761_v26  ;;  %336 = vmatprep.mubr.bf16.mxu0 %v1662_v0 }
  0x7f   :  { %1390 = vmatprep.mubr.bf16.mxu1 %v1763_v27  ;;  %812 = vmatpush1.bf16.msra.mxu1 %v1475_v30 }
  0x80   :  { %1399 = vmatpush3.bf16.msra.mxu0 %v1484_v29  ;;  %813 = vmatprep.subr.bf16.mxu1 %v1480_v31 }
  0x81   :  { %1400 = vmatprep.subr.bf16.mxu0 %v1488_v32 }
  0x83   :  { %814 = vmatpush1.bf16.msra.mxu1 %v1478_v35 }
  0x84   :  { %1401 = vmatpush3.bf16.msra.mxu0 %v1488_v32  ;;  %815 = vmatprep.subr.bf16.mxu1 %v1483_v36 }
  0x85   :  { %1402 = vmatprep.subr.bf16.mxu0 %v1492_v37  ;;  %337 = vmatmul.mubr.bf16.gmra.mrb[4].mxu0 %v1761_v26 }
  0x86   :  { %1391 = vmatmul.mubr.bf16.gmra.mrb[4].mxu1 %v1769_v33  ;;  %346 = vmatprep.mubr.bf16.mxu0 %v1662_v0 }
  0x87   :  { %1394 = vmatprep.mubr.bf16.mxu1 %v1771_v34  ;;  %816 = vmatpush1.bf16.msra.mxu1 %v1481_v38 }
  0x88   :  { %1403 = vmatpush3.bf16.msra.mxu0 %v1492_v37  ;;  %817 = vmatprep.subr.bf16.mxu1 %v1487_v39 }
  0x89   :  { %1404 = vmatprep.subr.bf16.mxu0 %v1496_v45 }
  0x8b   :  { %818 = vmatpush1.bf16.msra.mxu1 %v1485_v41 }
  0x8c   :  { %819 = vmatprep.subr.bf16.mxu1 %v1491_v42  ;;  %1405 = vmatpush3.bf16.msra.mxu0 %v1496_v45 }
  0x8d   :  { %347 = vmatmul.mubr.bf16.gmra.mrb[8].mxu0 %v1763_v27  ;;  %1406 = vmatprep.subr.bf16.mxu0 %v1500_v48 }
  0x8e   :  { %1395 = vmatmul.mubr.bf16.gmra.mrb[8].mxu1 %v1777_v40  ;;  %356 = vmatprep.mubr.bf16.mxu0 %v1662_v0 }
  0x8f   :  { %843 = vmatprep.mubr.bf16.mxu1 %v1662_v0  ;;  %820 = vmatpush1.bf16.msra.mxu1 %v1489_v43 }
  0x90   :  { %821 = vmatprep.subr.bf16.mxu1 %v1495_v44  ;;  %1407 = vmatpush3.bf16.msra.mxu0 %v1500_v48 }
  0x91   :  { %1408 = vmatprep.subr.bf16.mxu0 %v1504_v51 }
  0x93   :  { %822 = vmatpush1.bf16.msra.mxu1 %v1493_v46 }
  0x94   :  { %823 = vmatprep.subr.bf16.mxu1 %v1499_v47  ;;  %1409 = vmatpush3.bf16.msra.mxu0 %v1504_v51 }
  0x95   :  { %357 = vmatmul.mubr.bf16.gmra.mrb[12].mxu0 %v1769_v33  ;;  %1410 = vmatprep.subr.bf16.mxu0 %v1505_v53 }
  0x96   :  { %366 = vmatprep.mubr.bf16.mxu0 %v1662_v0 }
  0x97   :  { %824 = vmatpush1.bf16.msra.mxu1 %v1497_v49 }
  0x98   :  { %825 = vmatprep.subr.bf16.mxu1 %v1503_v50  ;;  %1411 = vmatpush3.bf16.msra.mxu0 %v1505_v53 }
  0x99   :  { %1412 = vmatprep.subr.bf16.mxu0 %v1506_v54 }
  0x9b   :  { %826 = vmatpush1.bf16.msra.mxu1 %v1501_v52 }
  0x9c   :  { %1413 = vmatpush3.bf16.msra.mxu0 %v1506_v54 }
  0x9d   :  { %367 = vmatmul.mubr.bf16.gmra.mrb[16].mxu0 %v1771_v34 }
  0x9e   :  { %376 = vmatprep.mubr.bf16.mxu0 %v1662_v0 }
  0xa5   :  { %377 = vmatmul.mubr.bf16.gmra.mrb[20].mxu0 %v1777_v40 }
 0x150   :  { %v328_v56 = vpop.f32.mrb[0].mxu0 }
 0x151   :  { %v1388_v57 = vpop.f32.mrb[0].mxu1  ;;  %v500_v58 = vrot.slane %v328_v56, 7  ;;  %v330_v60 = vpop.f32.mrb[1].mxu0 }
 0x152   :  { %v564_v59 = vrot.slane %v1388_v57, 1  ;;  %v421_v61 = vpop.f32.mrb[1].mxu1  ;;  %v475_v62 = vadd.f32 %v1788_v55, %v330_v60  ;;  %v332_v63 = vpop.f32.mrb[2].mxu0 }
 0x153   :  { %v1389_v1 = vpop.f32.mrb[2].mxu1  ;;  %v530_v2 = vsel %vm499_vm0, 0.0, %v500_v58  ;;  %v501_v3 = vrot.slane %v332_v63, 7  ;;  %v334_v5 = vpop.f32.mrb[3].mxu0  ;;  %v561_v8 = vrot.slane %v421_v61, 1 }
 0x154   :  { %v565_v4 = vrot.slane %v1389_v1, 1  ;;  %v424_v6 = vpop.f32.mrb[3].mxu1  ;;  %v536_v7 = vadd.f32 %v530_v2, %v475_v62  ;;  %v476_v9 = vadd.f32 %v1788_v55, %v334_v5 }
 0x155   :  { %v562_v10 = vrot.slane %v424_v6, 1  ;;  %v502_v12 = vsel %vm499_vm0, %v500_v58, %v501_v3 }
 0x156   :  { %v566_v11 = vsel %vm560_vm1, %v564_v59, %v565_v4  ;;  %v537_v13 = vadd.f32 %v502_v12, %v476_v9  ;;  %v592_v51 = vsel %vm560_vm1, %v565_v4, 0.0 }
 0x157   :  { %v563_v14 = vsel %vm560_vm1, %v561_v8, %v562_v10  ;;  %v591_v15 = vsel %vm560_vm1, %v562_v10, 0.0 }
 0x158   :  { %v597_v16 = vadd.f32 %v563_v14, %v536_v7  ;;  %v598_v17 = vadd.f32 %v591_v15, %v537_v13  ;;  %v338_v19 = vpop.f32.mrb[4].mxu0 }
 0x159   :  { %v1392_v20 = vpop.f32.mrb[4].mxu1  ;;  %v503_v22 = vrot.slane %v338_v19, 7  ;;  %v340_v23 = vpop.f32.mrb[5].mxu0 }
 0x15a   :  { %vm609_vm2 = vcmp.gt.f32.partialorder %v597_v16, 0.0  ;;  %v621_v21 = vmul.f32 0.1, %v597_v16  ;;  %vm610_vm3 = vcmp.gt.f32.partialorder %v598_v17, 0.0  ;;  %v622_v24 = vmul.f32 0.1, %v598_v17 }
 0x15b   :  { %v477_v25 = vadd.f32 %v1788_v55, %v340_v23  ;;  %v342_v28 = vpop.f32.mrb[6].mxu0  ;;  %v570_v29 = vrot.slane %v1392_v20, 1  ;;  %v437_v30 = vpop.f32.mrb[5].mxu1  ;;  %v531_v32 = vsel %vm499_vm0, 0.0, %v503_v22 }
 0x15c   :  { %v633_v31 = vsel %vm609_vm2, %v597_v16, %v621_v21  ;;  %v504_v35 = vrot.slane %v342_v28, 7  ;;  %v344_v36 = vpop.f32.mrb[7].mxu0  ;;  %v567_v37 = vrot.slane %v437_v30, 1  ;;  %v1799_v38 = vpop.f32.mrb[6].mxu1  ;;  %v634_v39 = vsel %vm610_vm3, %v598_v17, %v622_v24 }
 0x15d   :  { %v538_v41 = vadd.f32 %v531_v32, %v477_v25  ;;  %v478_v42 = vadd.f32 %v1788_v55, %v344_v36  ;;  %v571_v43 = vrot.slane %v1799_v38, 1  ;;  %v440_v44 = vpop.f32.mrb[7].mxu1  ;;  %v645_v45 = vpack.c.bf16 %v634_v39, %v633_v31 }
 0x15e   :  { %v505_v46 = vsel %vm499_vm0, %v503_v22, %v504_v35  ;;  %v568_v47 = vrot.slane %v440_v44, 1 }
 0x15f   :  { %v599_v48 = vadd.f32 %v566_v11, %v538_v41  ;;  %v539_v49 = vadd.f32 %v505_v46, %v478_v42  ;;  %v572_v50 = vsel %vm560_vm1, %v570_v29, %v571_v43  ;;  %844 = vmatmul.mubr.bf16.vlgmr.msra.gmra.mrb[12].mxu1 %v645_v45  ;;  %1414 = vmatprep.mubr.bf16.mxu0 %v645_v45 }
 0x160   :  { %v569_v52 = vsel %vm560_vm1, %v567_v37, %v568_v47  ;;  %v348_v56 = vpop.f32.mrb[8].mxu0  ;;  %853 = vmatprep.mubr.bf16.mxu1 %v1662_v0  ;;  %v593_v21 = vsel %vm560_vm1, %v568_v47, 0.0 }
 0x161   :  { %v623_v53 = vmul.f32 0.1, %v599_v48  ;;  %v600_v54 = vadd.f32 %v592_v51, %v539_v49  ;;  %vm611_vm4 = vcmp.gt.f32.partialorder %v599_v48, 0.0  ;;  %v1396_v57 = vpop.f32.mrb[8].mxu1  ;;  %v506_v58 = vrot.slane %v348_v56, 7  ;;  %v350_v59 = vpop.f32.mrb[9].mxu0 }
 0x162   :  { %v576_v60 = vrot.slane %v1396_v57, 1  ;;  %v453_v61 = vpop.f32.mrb[9].mxu1  ;;  %v479_v63 = vadd.f32 %v1788_v55, %v350_v59  ;;  %v352_v1 = vpop.f32.mrb[10].mxu0 }
 0x163   :  { %v624_v62 = vmul.f32 0.1, %v600_v54  ;;  %vm612_vm5 = vcmp.gt.f32.partialorder %v600_v54, 0.0  ;;  %v635_v2 = vsel %vm611_vm4, %v599_v48, %v623_v53  ;;  %v1811_v3 = vpop.f32.mrb[10].mxu1  ;;  %v532_v4 = vsel %vm499_vm0, 0.0, %v506_v58  ;;  %v354_v6 = vpop.f32.mrb[11].mxu0 }
 0x164   :  { %v507_v5 = vrot.slane %v352_v1, 7  ;;  %v573_v7 = vrot.slane %v453_v61, 1  ;;  %v577_v8 = vrot.slane %v1811_v3, 1  ;;  %v456_v9 = vpop.f32.mrb[11].mxu1  ;;  %v540_v10 = vadd.f32 %v532_v4, %v479_v63 }
 0x165   :  { %v480_v11 = vadd.f32 %v1788_v55, %v354_v6  ;;  %v636_v12 = vsel %vm612_vm5, %v600_v54, %v624_v62  ;;  %v574_v13 = vrot.slane %v456_v9, 1  ;;  %v594_v48 = vsel %vm560_vm1, %v571_v43, 0.0 }
 0x166   :  { %v508_v14 = vsel %vm499_vm0, %v506_v58, %v507_v5  ;;  %v646_v15 = vpack.c.bf16 %v636_v12, %v635_v2  ;;  %v1820_v16 = vsel %vm560_vm1, %v576_v60, %v577_v8  ;;  %v601_v17 = vadd.f32 %v569_v52, %v540_v10 }
 0x167   :  { %v541_v19 = vadd.f32 %v508_v14, %v480_v11  ;;  %v575_v20 = vsel %vm560_vm1, %v573_v7, %v574_v13  ;;  %v595_v5 = vsel %vm560_vm1, %v574_v13, 0.0 }
 0x168   :  { %854 = vmatmul.mubr.bf16.gmra.mrb[16].mxu1 %v646_v15  ;;  %1415 = vmatmul.mubr.bf16.vlgmr.msra.gmra.mrb[24].mxu0 %v646_v15  ;;  %v358_v23 = vpop.f32.mrb[12].mxu0  ;;  %v625_v24 = vmul.f32 0.1, %v601_v17  ;;  %vm613_vm6 = vcmp.gt.f32.partialorder %v601_v17, 0.0 }
 0x169   :  { %v602_v22 = vadd.f32 %v593_v21, %v541_v19  ;;  %863 = vmatprep.mubr.bf16.mxu1 %v1662_v0  ;;  %v509_v25 = vrot.slane %v358_v23, 7  ;;  %v360_v28 = vpop.f32.mrb[13].mxu0 }
 0x16a   :  { %v481_v30 = vadd.f32 %v1788_v55, %v360_v28  ;;  %v362_v31 = vpop.f32.mrb[14].mxu0  ;;  %v637_v41 = vsel %vm613_vm6, %v601_v17, %v625_v24 }
 0x16b   :  { %v626_v29 = vmul.f32 0.1, %v602_v22  ;;  %vm614_vm7 = vcmp.gt.f32.partialorder %v602_v22, 0.0  ;;  %v533_v32 = vsel %vm499_vm0, 0.0, %v509_v25  ;;  %v510_v35 = vrot.slane %v362_v31, 7  ;;  %v364_v36 = vpop.f32.mrb[15].mxu0 }
 0x16c   :  { %v542_v37 = vadd.f32 %v533_v32, %v481_v30  ;;  %v482_v39 = vadd.f32 %v1788_v55, %v364_v36  ;;  %v596_v30 = vsel %vm560_vm1, %v577_v8, 0.0 }
 0x16d   :  { %v638_v42 = vsel %vm614_vm7, %v602_v22, %v626_v29  ;;  %v511_v44 = vsel %vm499_vm0, %v509_v25, %v510_v35 }
 0x16e   :  { %v647_v45 = vpack.c.bf16 %v638_v42, %v637_v41  ;;  %v603_v46 = vadd.f32 %v572_v50, %v542_v37  ;;  %v543_v47 = vadd.f32 %v511_v44, %v482_v39 }
 0x170   :  { %864 = vmatmul.mubr.bf16.gmra.mrb[20].mxu1 %v647_v45  ;;  %1418 = vmatprep.mubr.bf16.mxu0 %v647_v45  ;;  %v627_v49 = vmul.f32 0.1, %v603_v46  ;;  %v604_v51 = vadd.f32 %v594_v48, %v543_v47  ;;  %v368_v52 = vpop.f32.mrb[16].mxu0  ;;  %vm615_vm8 = vcmp.gt.f32.partialorder %v603_v46, 0.0 }
 0x171   :  { %873 = vmatprep.mubr.bf16.mxu1 %v1662_v0  ;;  %v512_v53 = vrot.slane %v368_v52, 7  ;;  %v370_v54 = vpop.f32.mrb[17].mxu0 }
 0x172   :  { %v628_v56 = vmul.f32 0.1, %v604_v51  ;;  %v483_v57 = vadd.f32 %v1788_v55, %v370_v54  ;;  %v372_v58 = vpop.f32.mrb[18].mxu0  ;;  %vm616_vm9 = vcmp.gt.f32.partialorder %v604_v51, 0.0  ;;  %v639_v61 = vsel %vm615_vm8, %v603_v46, %v627_v49 }
 0x173   :  { %v534_v50 = vsel %vm499_vm0, 0.0, %v512_v53  ;;  %v513_v38 = vrot.slane %v372_v58, 7  ;;  %v374_v59 = vpop.f32.mrb[19].mxu0  ;;  %v1126_v58 = vunpack.c.l.bf16 %v1761_v26 }
 0x174   :  { %v544_v43 = vadd.f32 %v534_v50, %v483_v57  ;;  %v484_v60 = vadd.f32 %v1788_v55, %v374_v59  ;;  %v640_v62 = vsel %vm616_vm9, %v604_v51, %v628_v56  ;;  %v1124_v57 = vunpack.c.l.bf16 %v1758_v18 }
 0x175   :  { %v514_v63 = vsel %vm499_vm0, %v512_v53, %v513_v38  ;;  %v648_v1 = vpack.c.bf16 %v640_v62, %v639_v61 }
 0x176   :  { %v605_v2 = vadd.f32 %v575_v20, %v544_v43  ;;  %v545_v4 = vadd.f32 %v514_v63, %v484_v60 }
 0x177   :  { %1419 = vmatmul.mubr.bf16.gmra.mrb[28].mxu0 %v648_v1 }
 0x178   :  { %874 = vmatmul.mubr.bf16.gmra.mrb[24].mxu1 %v648_v1  ;;  %v606_v6 = vadd.f32 %v595_v5, %v545_v4  ;;  %v378_v7 = vpop.f32.mrb[20].mxu0  ;;  %v629_v9 = vmul.f32 0.1, %v605_v2  ;;  %vm617_vm10 = vcmp.gt.f32.partialorder %v605_v2, 0.0 }
 0x179   :  { %883 = vmatprep.mubr.bf16.mxu1 %v1662_v0  ;;  %v515_v10 = vrot.slane %v378_v7, 7  ;;  %v380_v11 = vpop.f32.mrb[21].mxu0  ;;  %v1125_v7 = vunpack.c.h.bf16 %v1758_v18 }
 0x17a   :  { %v630_v12 = vmul.f32 0.1, %v606_v6  ;;  %v485_v14 = vadd.f32 %v1788_v55, %v380_v11  ;;  %v382_v15 = vpop.f32.mrb[22].mxu0  ;;  %vm618_vm11 = vcmp.gt.f32.partialorder %v606_v6, 0.0  ;;  %v641_v22 = vsel %vm617_vm10, %v605_v2, %v629_v9 }
 0x17b   :  { %v535_v17 = vsel %vm499_vm0, 0.0, %v515_v10  ;;  %v516_v19 = vrot.slane %v382_v15, 7  ;;  %v384_v20 = vpop.f32.mrb[23].mxu0  ;;  %v1127_v9 = vunpack.c.h.bf16 %v1761_v26 }
 0x17c   :  { %v546_v13 = vadd.f32 %v535_v17, %v485_v14  ;;  %v486_v21 = vadd.f32 %v1788_v55, %v384_v20  ;;  %v642_v23 = vsel %vm618_vm11, %v606_v6, %v630_v12 }
 0x17d   :  { %v517_v24 = vsel %vm499_vm0, %v515_v10, %v516_v19  ;;  %v649_v25 = vpack.c.bf16 %v642_v23, %v641_v22 }
 0x17e   :  { %v607_v28 = vadd.f32 %v1820_v16, %v546_v13  ;;  %v547_v29 = vadd.f32 %v517_v24, %v486_v21  ;;  %v1848_v16 = vld [vmem:[#allocation10] ss:$0 sm:$0xff] }
 0x17f   :  { %1422 = vmatprep.mubr.bf16.mxu0 %v649_v25 }
 0x180   :  { %884 = vmatmul.mubr.bf16.gmra.mrb[28].mxu1 %v649_v25  ;;  %v631_v31 = vmul.f32 0.1, %v607_v28  ;;  %v608_v32 = vadd.f32 %v596_v30, %v547_v29  ;;  %vm619_vm12 = vcmp.gt.f32.partialorder %v607_v28, 0.0 }
 0x181   :  { %893 = vmatprep.mubr.bf16.mxu1 %v1662_v0 }
 0x182   :  { %v632_v55 = vmul.f32 0.1, %v608_v32  ;;  %vm620_vm13 = vcmp.gt.f32.partialorder %v608_v32, 0.0  ;;  %v643_v35 = vsel %vm619_vm12, %v607_v28, %v631_v31 }
 0x184   :  { %v644_v36 = vsel %vm620_vm13, %v608_v32, %v632_v55 }
 0x185   :  { %v650_v37 = vpack.c.bf16 %v644_v36, %v643_v35 }
 0x187   :  { %1423 = vmatmul.mubr.bf16.gmra.mrb[32].mxu0 %v650_v37 }
 0x188   :  { %894 = vmatmul.mubr.bf16.gmra.mrb[32].mxu1 %v650_v37 }
 0x232   :  { %v845_v39 = vpop.f32.mrb[12].mxu1 }
 0x233   :  { %v1016_v3 = vrot.slane %v845_v39, 7  ;;  %v847_v41 = vpop.f32.mrb[13].mxu1 }
 0x234   :  { %v992_v8 = vadd.f32 %v1848_v16, %v847_v41  ;;  %v849_v42 = vpop.f32.mrb[14].mxu1 }
 0x235   :  { %v1046_v44 = vsel %vm499_vm0, 0.0, %v1016_v3  ;;  %v1017_v45 = vrot.slane %v849_v42, 7  ;;  %v851_v0 = vpop.f32.mrb[15].mxu1 }
 0x236   :  { %v1052_v46 = vadd.f32 %v1046_v44, %v992_v8  ;;  %v993_v47 = vadd.f32 %v1848_v16, %v851_v0 }
 0x237   :  { %v1018_v48 = vsel %vm499_vm0, %v1016_v3, %v1017_v45 }
 0x238   :  { %v1053_v49 = vadd.f32 %v1018_v48, %v993_v47  ;;  %v1130_v47 = vunpack.c.l.bf16 %v1769_v33 }
 0x23b   :  { %v855_v51 = vpop.f32.mrb[16].mxu1  ;;  %v1416_v52 = vpop.f32.mrb[24].mxu0 }
 0x23c   :  { %v1019_v53 = vrot.slane %v855_v51, 7  ;;  %v857_v54 = vpop.f32.mrb[17].mxu1  ;;  %v938_v56 = vpop.f32.mrb[25].mxu0  ;;  %v1079_v60 = vrot.slane %v1416_v52, 1 }
 0x23d   :  { %v994_v50 = vadd.f32 %v1848_v16, %v857_v54  ;;  %v859_v38 = vpop.f32.mrb[18].mxu1  ;;  %v1417_v59 = vpop.f32.mrb[26].mxu0  ;;  %v1076_v4 = vrot.slane %v938_v56, 1 }
 0x23e   :  { %v1047_v43 = vsel %vm499_vm0, 0.0, %v1019_v53  ;;  %v1020_v61 = vrot.slane %v859_v38, 7  ;;  %v1080_v62 = vrot.slane %v1417_v59, 1  ;;  %v861_v63 = vpop.f32.mrb[19].mxu1  ;;  %v941_v1 = vpop.f32.mrb[27].mxu0 }
 0x23f   :  { %v1054_v2 = vadd.f32 %v1047_v43, %v994_v50  ;;  %v995_v5 = vadd.f32 %v1848_v16, %v861_v63  ;;  %v1077_v6 = vrot.slane %v941_v1, 1 }
 0x240   :  { %v1081_v10 = vsel %vm560_vm1, %v1079_v60, %v1080_v62  ;;  %v1021_v11 = vsel %vm499_vm0, %v1019_v53, %v1020_v61  ;;  %v1107_v19 = vsel %vm560_vm1, %v1080_v62, 0.0  ;;  %v1129_v60 = vunpack.c.h.bf16 %v1763_v27 }
 0x241   :  { %v1114_v12 = vadd.f32 %v1081_v10, %v1054_v2  ;;  %v1055_v14 = vadd.f32 %v1021_v11, %v995_v5  ;;  %v1078_v15 = vsel %vm560_vm1, %v1076_v4, %v1077_v6  ;;  %v1106_v17 = vsel %vm560_vm1, %v1077_v6, 0.0 }
 0x242   :  { %v1112_v20 = vadd.f32 %v1078_v15, %v1052_v46  ;;  %v1113_v13 = vadd.f32 %v1106_v17, %v1053_v49  ;;  %v1128_v46 = vunpack.c.l.bf16 %v1763_v27  ;;  %v1131_v61 = vunpack.c.h.bf16 %v1769_v33 }
 0x243   :  { %v1138_v21 = vadd.f32 %v1126_v58, %v1114_v12  ;;  %v1115_v22 = vadd.f32 %v1107_v19, %v1055_v14  ;;  %v865_v23 = vpop.f32.mrb[20].mxu1 }
 0x244   :  { %v1136_v18 = vadd.f32 %v1124_v57, %v1112_v20  ;;  %v1137_v24 = vadd.f32 %v1125_v7, %v1113_v13  ;;  %v1022_v26 = vrot.slane %v865_v23, 7  ;;  %v867_v25 = vpop.f32.mrb[21].mxu1 }
 0x245   :  { %v1139_v28 = vadd.f32 %v1127_v9, %v1115_v22  ;;  %v996_v29 = vadd.f32 %v1848_v16, %v867_v25  ;;  %v869_v30 = vpop.f32.mrb[22].mxu1 }
 0x246   :  { %v1310_v31 = vpack.c.bf16 %v1137_v24, %v1136_v18  ;;  %v1048_v32 = vsel %vm499_vm0, 0.0, %v1022_v26  ;;  %v1023_v55 = vrot.slane %v869_v30, 7  ;;  %v871_v35 = vpop.f32.mrb[23].mxu1 }
 0x247   :  { %v1315_v36 = vpack.c.bf16 %v1139_v28, %v1138_v21  ;;  %v1056_v37 = vadd.f32 %v1048_v32, %v996_v29  ;;  %v997_v39 = vadd.f32 %v1848_v16, %v871_v35  ;;  %v1132_v35 = vunpack.c.l.bf16 %v1771_v34 }
 0x248   :  { %1311 = vst [vmem:[#allocation11] sm:$0xff] %v1310_v31   ;;  %v1024_v3 = vsel %vm499_vm0, %v1022_v26, %v1023_v55 }
 0x249   :  { %1337 = vst [vmem:[#allocation11 + $0x8] sm:$0xff] %v1315_v36   ;;  %v1057_v41 = vadd.f32 %v1024_v3, %v997_v39  ;;  %v1134_v36 = vunpack.c.l.bf16 %v1777_v40 }
 0x24a   :  { %v1420_v42 = vpop.f32.mrb[28].mxu0 }
 0x24b   :  { %v875_v8 = vpop.f32.mrb[24].mxu1  ;;  %v954_v0 = vpop.f32.mrb[29].mxu0  ;;  %v1085_v53 = vrot.slane %v1420_v42, 1 }
 0x24c   :  { %v1025_v44 = vrot.slane %v875_v8, 7  ;;  %v877_v45 = vpop.f32.mrb[25].mxu1  ;;  %v1421_v51 = vpop.f32.mrb[30].mxu0  ;;  %v1082_v38 = vrot.slane %v954_v0, 1 }
 0x24d   :  { %v998_v48 = vadd.f32 %v1848_v16, %v877_v45  ;;  %v879_v49 = vpop.f32.mrb[26].mxu1  ;;  %v1086_v56 = vrot.slane %v1421_v51, 1  ;;  %v957_v58 = vpop.f32.mrb[31].mxu0  ;;  %v1133_v51 = vunpack.c.h.bf16 %v1771_v34 }
 0x24e   :  { %v1049_v52 = vsel %vm499_vm0, 0.0, %v1025_v44  ;;  %v1026_v54 = vrot.slane %v879_v49, 7  ;;  %v881_v57 = vpop.f32.mrb[27].mxu1  ;;  %v1083_v43 = vrot.slane %v957_v58, 1 }
 0x24f   :  { %v1058_v50 = vadd.f32 %v1049_v52, %v998_v48  ;;  %v999_v59 = vadd.f32 %v1848_v16, %v881_v57  ;;  %v1087_v62 = vsel %vm560_vm1, %v1085_v53, %v1086_v56  ;;  %v1109_v6 = vsel %vm560_vm1, %v1086_v56, 0.0 }
 0x250   :  { %v1027_v63 = vsel %vm499_vm0, %v1025_v44, %v1026_v54  ;;  %v1084_v4 = vsel %vm560_vm1, %v1082_v38, %v1083_v43  ;;  %v1108_v5 = vsel %vm560_vm1, %v1083_v43, 0.0  ;;  %v1135_v52 = vunpack.c.h.bf16 %v1777_v40 }
 0x251   :  { %v1118_v1 = vadd.f32 %v1087_v62, %v1058_v50  ;;  %v1059_v2 = vadd.f32 %v1027_v63, %v999_v59  ;;  %v1116_v7 = vadd.f32 %v1084_v4, %v1056_v37  ;;  %v1117_v9 = vadd.f32 %v1108_v5, %v1057_v41 }
 0x253   :  { %v1142_v10 = vadd.f32 %v1130_v47, %v1118_v1  ;;  %v1119_v11 = vadd.f32 %v1109_v6, %v1059_v2  ;;  %v885_v12 = vpop.f32.mrb[28].mxu1  ;;  %v1140_v27 = vadd.f32 %v1128_v46, %v1116_v7  ;;  %v1141_v14 = vadd.f32 %v1129_v60, %v1117_v9 }
 0x254   :  { %v1028_v33 = vrot.slane %v885_v12, 7  ;;  %v887_v15 = vpop.f32.mrb[29].mxu1 }
 0x255   :  { %v1143_v17 = vadd.f32 %v1131_v61, %v1119_v11  ;;  %v1000_v19 = vadd.f32 %v1848_v16, %v887_v15  ;;  %v889_v20 = vpop.f32.mrb[30].mxu1  ;;  %v1320_v13 = vpack.c.bf16 %v1141_v14, %v1140_v27 }
 0x256   :  { %v1050_v21 = vsel %vm499_vm0, 0.0, %v1028_v33  ;;  %v1029_v22 = vrot.slane %v889_v20, 7  ;;  %v891_v23 = vpop.f32.mrb[31].mxu1 }
 0x257   :  { %v1325_v18 = vpack.c.bf16 %v1143_v17, %v1142_v10  ;;  %v1060_v24 = vadd.f32 %v1050_v21, %v1000_v19  ;;  %v1001_v26 = vadd.f32 %v1848_v16, %v891_v23  ;;  %1338 = vst [vmem:[#allocation11 + $0x10] sm:$0xff] %v1320_v13  }
 0x258   :  { %v1030_v25 = vsel %vm499_vm0, %v1028_v33, %v1029_v22 }
 0x259   :  { %1339 = vst [vmem:[#allocation11 + $0x18] sm:$0xff] %v1325_v18   ;;  %v1061_v28 = vadd.f32 %v1030_v25, %v1001_v26 }
 0x25a   :  { %v1424_v30 = vpop.f32.mrb[32].mxu0 }
 0x25b   :  { %v895_v29 = vpop.f32.mrb[32].mxu1  ;;  %v970_v55 = vpop.f32.mrb[33].mxu0  ;;  %v1091_v8 = vrot.slane %v1424_v30, 1 }
 0x25c   :  { %v1031_v31 = vrot.slane %v895_v29, 7  ;;  %v897_v32 = vpop.f32.mrb[33].mxu1  ;;  %v1425_v3 = vpop.f32.mrb[34].mxu0  ;;  %v1088_v47 = vrot.slane %v970_v55, 1 }
 0x25d   :  { %v1002_v37 = vadd.f32 %v1848_v16, %v897_v32  ;;  %v899_v39 = vpop.f32.mrb[34].mxu1  ;;  %v1092_v44 = vrot.slane %v1425_v3, 1  ;;  %v973_v0 = vpop.f32.mrb[35].mxu0 }
 0x25e   :  { %v1051_v41 = vsel %vm499_vm0, 0.0, %v1031_v31  ;;  %v1032_v42 = vrot.slane %v899_v39, 7  ;;  %v901_v45 = vpop.f32.mrb[35].mxu1  ;;  %v1089_v49 = vrot.slane %v973_v0, 1 }
 0x25f   :  { %v1062_v46 = vadd.f32 %v1051_v41, %v1002_v37  ;;  %v1003_v48 = vadd.f32 %v1848_v16, %v901_v45  ;;  %v1093_v53 = vsel %vm560_vm1, %v1091_v8, %v1092_v44  ;;  %v1111_v38 = vsel %vm560_vm1, %v1092_v44, 0.0 }
 0x260   :  { %v1033_v54 = vsel %vm499_vm0, %v1031_v31, %v1032_v42  ;;  %v1090_v58 = vsel %vm560_vm1, %v1088_v47, %v1089_v49  ;;  %v1110_v50 = vsel %vm560_vm1, %v1089_v49, 0.0 }
 0x261   :  { %v1122_v56 = vadd.f32 %v1093_v53, %v1062_v46  ;;  %v1063_v57 = vadd.f32 %v1033_v54, %v1003_v48  ;;  %v1120_v59 = vadd.f32 %v1090_v58, %v1060_v24  ;;  %v1121_v43 = vadd.f32 %v1110_v50, %v1061_v28 }
 0x263   :  { %v1146_v16 = vadd.f32 %v1134_v36, %v1122_v56  ;;  %v1123_v60 = vadd.f32 %v1111_v38, %v1063_v57  ;;  %v1144_v61 = vadd.f32 %v1132_v35, %v1120_v59  ;;  %v1145_v34 = vadd.f32 %v1133_v51, %v1121_v43 }
 0x265   :  { %v1147_v40 = vadd.f32 %v1135_v52, %v1123_v60  ;;  %v1330_v62 = vpack.c.bf16 %v1145_v34, %v1144_v61 }
 0x267   :  { %v1335_v63 = vpack.c.bf16 %v1147_v40, %v1146_v16  ;;  %1340 = vst [vmem:[#allocation11 + $0x20] sm:$0xff] %v1330_v62  }
 0x269   :  { %1341 = vst [vmem:[#allocation11 + $0x28] sm:$0xff] %v1335_v63  }
 0x26a   :  { %1634 = shalt.err (!%p1631_p2)
}
 0x26b   :  { %s1635_s9 = scalar_lea.hbm %s1918_s5, 768 }
 0x26c   :  { %p1636_p3 = scmp.ne.s32.totalorder %s1918_s5, %s1635_s9  ;;  %p1639_p4 = scmp.lt.u32.totalorder %s1635_s9, %s1918_s5 }
 0x26e   :  { %p1641_p5 = pnand %p1639_p4, %p1636_p3 }
 0x270   :  { %1644 = shalt.err (!%p1641_p5)
}
 0x271   :  { %1219 = dma.vmem_to_hbm [thread:$0]  %s1214_s30, 768, %s1918_s5, [#allocation4], %s1658_s3, %s1658_s3, %s1659_s28  }
 0x272   :  { %1651 = dma.done.wait [#allocation4], 768  }
 0x273   :  { %1652 = vsyncadd [#allocation4], 4294966528 }
 0x274   :  { %1223 = vsyncpa [#allocation3], 1 }
 0x275   :  { %1224 = vsyncpa [#allocation6], 1 }
 0x276   :  { %1225 = vsyncpa [#allocation9], 1 }
 0x277   :  { %1226 = vsyncpa [#allocation4], 1 }

</bundles_post_ra>
